<compile_context>
chip_gen: v7x
topology: tpu7x:2x2x1
jax: 0.10.0
libtpu: 0.0.40
codegen_flags: <defaults>
</compile_context>

<pallas_src>
import math
import functools

import jax
import jax.numpy as jnp
from jax.experimental import pallas as pl
from jax.experimental.pallas import tpu as pltpu


# ----------------------------- Pallas kernel -------------------------------


def _layer_norm(h, gamma, beta, eps=1e-5):
    # f32 vector math (no bf16 here: v5e has no bf16 VPU/EUP).
    mu = jnp.mean(h, axis=-1, keepdims=True)
    xc = h - mu
    var = jnp.mean(xc * xc, axis=-1, keepdims=True)
    inv = jax.lax.rsqrt(var + eps)
    return xc * inv * gamma + beta


def _proj(x_f32, w_ref):
    """y = x @ W^T with W in PyTorch [out, in] layout.

    Operands are cast to bf16 (MXU-native on v5e/v6e/v7x); accumulation stays
    f32.  Contracting over dim 1 of the RHS avoids any transpose/relayout.
    """
    return jax.lax.dot_general(
        x_f32.astype(jnp.bfloat16),
        w_ref[...],
        dimension_numbers=(((1,), (1,)), ((), ())),
        preferred_element_type=jnp.float32,
    )


def transformer_kernel(
    x_ref,                            # (B*S, D) f32  embedded + pos-encoded input
    wq_ref, wk_ref, wv_ref,           # (D, D) bf16, PyTorch [out, in]
    bq_ref, bk_ref, bv_ref,           # (1, D) f32
    wo_ref, bo_ref,                   # (D, D) bf16, (1, D) f32
    ln1w_ref, ln1b_ref,               # (1, D) f32
    w1_ref, b1_ref,                   # (M, D) bf16, (1, M) f32
    w2_ref, b2_ref,                   # (D, M) bf16, (1, D) f32
    ln2w_ref, ln2b_ref,               # (1, D) f32
    out_ref,                          # (B*S, D) f32
    *, batch, seq,
):
    x = x_ref[...]                                     # (B*S, D) f32, residual stream
    d_model = x.shape[-1]
    scale = 1.0 / math.sqrt(d_model)                   # nhead=1 -> head_dim = D

    # ---- Multi-head attention (nhead=1), QKV on the flattened batch ----
    q = _proj(x, wq_ref) + bq_ref[...]                 # (B*S, D) f32
    k = _proj(x, wk_ref) + bk_ref[...]
    v = _proj(x, wv_ref) + bv_ref[...]

    q3 = q.reshape(batch, seq, d_model).astype(jnp.bfloat16)
    k3 = k.reshape(batch, seq, d_model).astype(jnp.bfloat16)
    v3 = v.reshape(batch, seq, d_model).astype(jnp.bfloat16)

    # Batched scores: contraction over d of both operands (no k.T relayout).
    scores = jnp.einsum(
        "bqd,bkd->bqk", q3, k3, preferred_element_type=jnp.float32
    ) * scale                                          # (B, S, S) f32

    m = jnp.max(scores, axis=-1, keepdims=True)
    e = jnp.exp(scores - m)
    p = e * pl.reciprocal(jnp.sum(e, axis=-1, keepdims=True), approx=True)

    attn = jnp.einsum(
        "bqk,bkd->bqd", p.astype(jnp.bfloat16), v3,
        preferred_element_type=jnp.float32,
    ).reshape(batch * seq, d_model)                    # (B*S, D) f32

    attn_out = _proj(attn, wo_ref) + bo_ref[...]

    # ---- Residual + LayerNorm 1 (f32) ----
    h1 = _layer_norm(x + attn_out, ln1w_ref[...], ln1b_ref[...])

    # ---- MLP ----
    hidden = jnp.maximum(_proj(h1, w1_ref) + b1_ref[...], 0.0)   # (B*S, M)
    mlp_out = _proj(hidden, w2_ref) + b2_ref[...]                # (B*S, D)

    # ---- Residual + LayerNorm 2 (f32) ----
    out_ref[...] = _layer_norm(h1 + mlp_out, ln2w_ref[...], ln2b_ref[...])


# ------------------------------ wrapper -------------------------------------


def positional_encoding(seq_len, d_model):
    position = jnp.arange(seq_len, dtype=jnp.float32)[:, None]
    div_term = jnp.exp(
        jnp.arange(0, d_model, 2, dtype=jnp.float32) * (-math.log(10000.0) / d_model)
    )
    pe = jnp.zeros((seq_len, d_model), dtype=jnp.float32)
    pe = pe.at[:, 0::2].set(jnp.sin(position * div_term))
    pe = pe.at[:, 1::2].set(jnp.cos(position * div_term))
    return pe


def init_params(key, vocab_size, d_model, mlp_dim):
    ks = jax.random.split(key, 10)
    s = 0.02
    params = {
        "emb": jax.random.normal(ks[0], (vocab_size, d_model), jnp.float32) * s,
        # MHA in_proj split into q/k/v, PyTorch layout [out, in]
        "wq": jax.random.normal(ks[1], (d_model, d_model), jnp.float32) * s,
        "wk": jax.random.normal(ks[2], (d_model, d_model), jnp.float32) * s,
        "wv": jax.random.normal(ks[3], (d_model, d_model), jnp.float32) * s,
        "bq": jax.random.normal(ks[4], (d_model,), jnp.float32) * s,
        "bk": jnp.zeros((d_model,), jnp.float32),
        "bv": jnp.zeros((d_model,), jnp.float32),
        "wo": jax.random.normal(ks[5], (d_model, d_model), jnp.float32) * s,
        "bo": jnp.zeros((d_model,), jnp.float32),
        "ln1_w": jnp.ones((d_model,), jnp.float32),
        "ln1_b": jnp.zeros((d_model,), jnp.float32),
        "w1": jax.random.normal(ks[6], (mlp_dim, d_model), jnp.float32) * s,
        "b1": jax.random.normal(ks[7], (mlp_dim,), jnp.float32) * s,
        "w2": jax.random.normal(ks[8], (d_model, mlp_dim), jnp.float32) * s,
        "b2": jax.random.normal(ks[9], (d_model,), jnp.float32) * s,
        "ln2_w": jnp.ones((d_model,), jnp.float32),
        "ln2_b": jnp.zeros((d_model,), jnp.float32),
    }
    return params


def prepare_kernel_params(params):
    """One-time (outside jit) conversion for the kernel:

    * weight matrices -> bfloat16, kept in PyTorch [out, in] layout
      (halves the dominant HBM weight traffic; no per-call transposes/casts)
    * biases / LayerNorm params -> (1, N) f32 rows
    * embedding table stays f32 (used by the plain-JAX gather).
    """
    bf16 = lambda w: w.astype(jnp.bfloat16)
    row = lambda v: v.reshape(1, -1).astype(jnp.float32)
    return {
        "emb": params["emb"],
        "wq": bf16(params["wq"]), "wk": bf16(params["wk"]), "wv": bf16(params["wv"]),
        "bq": row(params["bq"]), "bk": row(params["bk"]), "bv": row(params["bv"]),
        "wo": bf16(params["wo"]), "bo": row(params["bo"]),
        "ln1_w": row(params["ln1_w"]), "ln1_b": row(params["ln1_b"]),
        "w1": bf16(params["w1"]), "b1": row(params["b1"]),
        "w2": bf16(params["w2"]), "b2": row(params["b2"]),
        "ln2_w": row(params["ln2_w"]), "ln2_b": row(params["ln2_b"]),
    }


@jax.jit
def one_layer_transformer(tokens, kp):
    """tokens: int32 [B, S]  ->  float32 [B, S, D]."""
    B, S = tokens.shape
    D = kp["emb"].shape[1]
    M = kp["w1"].shape[0]

    # Glue: embedding gather * sqrt(d_model) + positional encoding (plain JAX),
    # flattened to (B*S, D) so the whole batch runs in one kernel invocation.
    x = kp["emb"][tokens] * math.sqrt(D) + positional_encoding(S, D)[None]
    x = x.reshape(B * S, D).astype(jnp.float32)

    kernel = functools.partial(transformer_kernel, batch=B, seq=S)

    def full(shp):
        return pl.BlockSpec(shp, lambda i: (0,) * len(shp))

    out = pl.pallas_call(
        kernel,
        out_shape=jax.ShapeDtypeStruct((B * S, D), jnp.float32),
        grid_spec=pltpu.PrefetchScalarGridSpec(
            num_scalar_prefetch=0,
            grid=(1,),                      # single step: no per-batch grid overhead
            in_specs=[
                full((B * S, D)),
                full((D, D)), full((D, D)), full((D, D)),      # wq wk wv
                full((1, D)), full((1, D)), full((1, D)),      # bq bk bv
                full((D, D)), full((1, D)),                    # wo bo
                full((1, D)), full((1, D)),                    # ln1
                full((M, D)), full((1, M)),                    # w1 b1
                full((D, M)), full((1, D)),                    # w2 b2
                full((1, D)), full((1, D)),                    # ln2
            ],
            out_specs=full((B * S, D)),
        ),
        compiler_params=pltpu.CompilerParams(
            # Size-1 grid: never megacore-shard (would duplicate weight DMA on v7x).
            dimension_semantics=("arbitrary",),
        ),
    )(
        x,
        kp["wq"], kp["wk"], kp["wv"],
        kp["bq"], kp["bk"], kp["bv"],
        kp["wo"], kp["bo"],
        kp["ln1_w"], kp["ln1_b"],
        kp["w1"], kp["b1"],
        kp["w2"], kp["b2"],
        kp["ln2_w"], kp["ln2_b"],
    )
    return out.reshape(B, S, D)


# ------------------------- pure-JAX reference --------------------------------


def reference_forward(tokens, params):
    B, S = tokens.shape
    D = params["emb"].shape[1]
    x = params["emb"][tokens] * math.sqrt(D) + positional_encoding(S, D)[None]

    def ln(h, g, b, eps=1e-5):
        mu = jnp.mean(h, -1, keepdims=True)
        var = jnp.mean((h - mu) ** 2, -1, keepdims=True)
        return (h - mu) / jnp.sqrt(var + eps) * g + b

    q = x @ params["wq"].T + params["bq"]
    k = x @ params["wk"].T + params["bk"]
    v = x @ params["wv"].T + params["bv"]
    scores = jnp.einsum("bqd,bkd->bqk", q, k) / math.sqrt(D)
    p = jax.nn.softmax(scores, axis=-1)
    attn = jnp.einsum("bqk,bkd->bqd", p, v) @ params["wo"].T + params["bo"]
    h1 = ln(x + attn, params["ln1_w"], params["ln1_b"])
    hidden = jnp.maximum(h1 @ params["w1"].T + params["b1"], 0.0)
    mlp_out = hidden @ params["w2"].T + params["b2"]
    return ln(h1 + mlp_out, params["ln2_w"], params["ln2_b"])


# --------------------------------- main --------------------------------------

if __name__ == "__main__":
    VOCAB, D_MODEL, MLP_DIM = 32, 128, 512
    B, S = 2, 8

    key = jax.random.PRNGKey(0)
    k_tok, k_par = jax.random.split(key)
    tokens = jax.random.randint(k_tok, (B, S), 0, VOCAB, dtype=jnp.int32)
    params = init_params(k_par, VOCAB, D_MODEL, MLP_DIM)
    kparams = prepare_kernel_params(params)   # one-time bf16/layout prep, outside jit

    out = jax.block_until_ready(one_layer_transformer(tokens, kparams))

    ref = reference_forward(tokens, params)   # pure f32 reference (module semantics)
    assert out.shape == (B, S, D_MODEL)
    # Tolerance accounts for bf16 matmul operands (f32 accumulation) and the
    # approx EUP reciprocal in softmax; observed error is ~1e-3.
    max_err = float(jnp.max(jnp.abs(out - ref)))
    assert jnp.allclose(out, ref, rtol=1e-2, atol=1e-2), (
        f"mismatch vs reference (max abs err {max_err})"
    )

    print("KERNEL_OK")
</pallas_src>

<mosaic_0001>
module attributes {stable_mosaic.version = 11 : i64} {
  func.func @transformer_kernel(%arg0: i32, %arg1: memref<16x128xf32, #tpu.memory_space<vmem>>, %arg2: memref<128x128xbf16, #tpu.memory_space<vmem>>, %arg3: memref<128x128xbf16, #tpu.memory_space<vmem>>, %arg4: memref<128x128xbf16, #tpu.memory_space<vmem>>, %arg5: memref<1x128xf32, #tpu.memory_space<vmem>>, %arg6: memref<1x128xf32, #tpu.memory_space<vmem>>, %arg7: memref<1x128xf32, #tpu.memory_space<vmem>>, %arg8: memref<128x128xbf16, #tpu.memory_space<vmem>>, %arg9: memref<1x128xf32, #tpu.memory_space<vmem>>, %arg10: memref<1x128xf32, #tpu.memory_space<vmem>>, %arg11: memref<1x128xf32, #tpu.memory_space<vmem>>, %arg12: memref<512x128xbf16, #tpu.memory_space<vmem>>, %arg13: memref<1x512xf32, #tpu.memory_space<vmem>>, %arg14: memref<128x512xbf16, #tpu.memory_space<vmem>>, %arg15: memref<1x128xf32, #tpu.memory_space<vmem>>, %arg16: memref<1x128xf32, #tpu.memory_space<vmem>>, %arg17: memref<1x128xf32, #tpu.memory_space<vmem>>, %arg18: memref<16x128xf32, #tpu.memory_space<vmem>>) attributes {dimension_semantics = [#tpu.dimension_semantics<arbitrary>], iteration_bounds = array<i64: 1>, scalar_prefetch = 0 : i64, scratch_operands = 0 : i64, tpu.core_type = #tpu.core_type<tc>, window_params = [{pipeline_mode = #tpu.pipeline_mode<synchronous>, transform_indices = @transform_0, window_bounds = array<i64: 16, 128>}, {pipeline_mode = #tpu.pipeline_mode<synchronous>, transform_indices = @transform_1, window_bounds = array<i64: 128, 128>}, {pipeline_mode = #tpu.pipeline_mode<synchronous>, transform_indices = @transform_2, window_bounds = array<i64: 128, 128>}, {pipeline_mode = #tpu.pipeline_mode<synchronous>, transform_indices = @transform_3, window_bounds = array<i64: 128, 128>}, {pipeline_mode = #tpu.pipeline_mode<synchronous>, transform_indices = @transform_4, window_bounds = array<i64: 1, 128>}, {pipeline_mode = #tpu.pipeline_mode<synchronous>, transform_indices = @transform_5, window_bounds = array<i64: 1, 128>}, {pipeline_mode = #tpu.pipeline_mode<synchronous>, transform_indices = @transform_6, window_bounds = array<i64: 1, 128>}, {pipeline_mode = #tpu.pipeline_mode<synchronous>, transform_indices = @transform_7, window_bounds = array<i64: 128, 128>}, {pipeline_mode = #tpu.pipeline_mode<synchronous>, transform_indices = @transform_8, window_bounds = array<i64: 1, 128>}, {pipeline_mode = #tpu.pipeline_mode<synchronous>, transform_indices = @transform_9, window_bounds = array<i64: 1, 128>}, {pipeline_mode = #tpu.pipeline_mode<synchronous>, transform_indices = @transform_10, window_bounds = array<i64: 1, 128>}, {pipeline_mode = #tpu.pipeline_mode<synchronous>, transform_indices = @transform_11, window_bounds = array<i64: 512, 128>}, {pipeline_mode = #tpu.pipeline_mode<synchronous>, transform_indices = @transform_12, window_bounds = array<i64: 1, 512>}, {pipeline_mode = #tpu.pipeline_mode<synchronous>, transform_indices = @transform_13, window_bounds = array<i64: 128, 512>}, {pipeline_mode = #tpu.pipeline_mode<synchronous>, transform_indices = @transform_14, window_bounds = array<i64: 1, 128>}, {pipeline_mode = #tpu.pipeline_mode<synchronous>, transform_indices = @transform_15, window_bounds = array<i64: 1, 128>}, {pipeline_mode = #tpu.pipeline_mode<synchronous>, transform_indices = @transform_16, window_bounds = array<i64: 1, 128>}, {pipeline_mode = #tpu.pipeline_mode<synchronous>, transform_indices = @transform_17, window_bounds = array<i64: 16, 128>}]} {
    %c0 = arith.constant 0 : index
    %c0_0 = arith.constant 0 : index
    %0 = vector.load %arg1[%c0, %c0_0] : memref<16x128xf32, #tpu.memory_space<vmem>>, vector<16x128xf32>
    %1 = arith.truncf %0 : vector<16x128xf32> to vector<16x128xbf16>
    %c0_1 = arith.constant 0 : index
    %c0_2 = arith.constant 0 : index
    %2 = vector.load %arg2[%c0_1, %c0_2] : memref<128x128xbf16, #tpu.memory_space<vmem>>, vector<128x128xbf16>
    %cst = arith.constant dense<0.000000e+00> : vector<16x128xf32>
    %3 = tpu.matmul %1, %2, %cst {dimension_numbers = #tpu.dot_dimension_numbers<[1], [1], [0], [0], [0, 0, 1, 0], [], []>} : vector<16x128xbf16>, vector<128x128xbf16>, vector<16x128xf32> -> vector<16x128xf32>
    %c0_3 = arith.constant 0 : index
    %c0_4 = arith.constant 0 : index
    %4 = vector.load %arg5[%c0_3, %c0_4] : memref<1x128xf32, #tpu.memory_space<vmem>>, vector<1x128xf32>
    %5 = vector.broadcast %4 : vector<1x128xf32> to vector<16x128xf32>
    %6 = arith.addf %3, %5 : vector<16x128xf32>
    %7 = arith.truncf %0 : vector<16x128xf32> to vector<16x128xbf16>
    %c0_5 = arith.constant 0 : index
    %c0_6 = arith.constant 0 : index
    %8 = vector.load %arg3[%c0_5, %c0_6] : memref<128x128xbf16, #tpu.memory_space<vmem>>, vector<128x128xbf16>
    %cst_7 = arith.constant dense<0.000000e+00> : vector<16x128xf32>
    %9 = tpu.matmul %7, %8, %cst_7 {dimension_numbers = #tpu.dot_dimension_numbers<[1], [1], [0], [0], [0, 0, 1, 0], [], []>} : vector<16x128xbf16>, vector<128x128xbf16>, vector<16x128xf32> -> vector<16x128xf32>
    %c0_8 = arith.constant 0 : index
    %c0_9 = arith.constant 0 : index
    %10 = vector.load %arg6[%c0_8, %c0_9] : memref<1x128xf32, #tpu.memory_space<vmem>>, vector<1x128xf32>
    %11 = vector.broadcast %10 : vector<1x128xf32> to vector<16x128xf32>
    %12 = arith.addf %9, %11 : vector<16x128xf32>
    %13 = arith.truncf %0 : vector<16x128xf32> to vector<16x128xbf16>
    %c0_10 = arith.constant 0 : index
    %c0_11 = arith.constant 0 : index
    %14 = vector.load %arg4[%c0_10, %c0_11] : memref<128x128xbf16, #tpu.memory_space<vmem>>, vector<128x128xbf16>
    %cst_12 = arith.constant dense<0.000000e+00> : vector<16x128xf32>
    %15 = tpu.matmul %13, %14, %cst_12 {dimension_numbers = #tpu.dot_dimension_numbers<[1], [1], [0], [0], [0, 0, 1, 0], [], []>} : vector<16x128xbf16>, vector<128x128xbf16>, vector<16x128xf32> -> vector<16x128xf32>
    %c0_13 = arith.constant 0 : index
    %c0_14 = arith.constant 0 : index
    %16 = vector.load %arg7[%c0_13, %c0_14] : memref<1x128xf32, #tpu.memory_space<vmem>>, vector<1x128xf32>
    %17 = vector.broadcast %16 : vector<1x128xf32> to vector<16x128xf32>
    %18 = arith.addf %15, %17 : vector<16x128xf32>
    %19 = vector.shape_cast %6 : vector<16x128xf32> to vector<2x8x128xf32>
    %20 = arith.truncf %19 : vector<2x8x128xf32> to vector<2x8x128xbf16>
    %21 = vector.shape_cast %12 : vector<16x128xf32> to vector<2x8x128xf32>
    %22 = arith.truncf %21 : vector<2x8x128xf32> to vector<2x8x128xbf16>
    %23 = vector.shape_cast %18 : vector<16x128xf32> to vector<2x8x128xf32>
    %24 = arith.truncf %23 : vector<2x8x128xf32> to vector<2x8x128xbf16>
    "tpu.trace_start"() <{level = 10 : i32, message = "bqd,bkd->bqk"}> : () -> ()
    %cst_15 = arith.constant dense<0.000000e+00> : vector<2x8x8xf32>
    %25 = tpu.matmul %20, %22, %cst_15 {dimension_numbers = #tpu.dot_dimension_numbers<[2], [2], [1], [1], [0, 0, 0, 1, 1, 1], [0], [0]>} : vector<2x8x128xbf16>, vector<2x8x128xbf16>, vector<2x8x8xf32> -> vector<2x8x8xf32>
    "tpu.trace_stop"() : () -> ()
    %cst_16 = arith.constant 0.0883883461 : f32
    %26 = vector.broadcast %cst_16 : f32 to vector<2x8x8xf32>
    %27 = arith.mulf %25, %26 : vector<2x8x8xf32>
    %cst_17 = arith.constant dense<0xFF800000> : vector<2x8xf32>
    %28 = vector.multi_reduction <maximumf>, %27, %cst_17 [2] : vector<2x8x8xf32> to vector<2x8xf32>
    %29 = vector.shape_cast %28 : vector<2x8xf32> to vector<2x8x1xf32>
    %30 = vector.broadcast %29 : vector<2x8x1xf32> to vector<2x8x8xf32>
    %31 = arith.subf %27, %30 : vector<2x8x8xf32>
    %32 = math.exp %31 : vector<2x8x8xf32>
    %cst_18 = arith.constant dense<0.000000e+00> : vector<2x8xf32>
    %33 = vector.multi_reduction <add>, %32, %cst_18 [2] : vector<2x8x8xf32> to vector<2x8xf32>
    %34 = vector.shape_cast %33 : vector<2x8xf32> to vector<2x8x1xf32>
    %35 = tpu.reciprocal %34 {approx = true} : vector<2x8x1xf32> -> vector<2x8x1xf32>
    %36 = vector.broadcast %35 : vector<2x8x1xf32> to vector<2x8x8xf32>
    %37 = arith.mulf %32, %36 : vector<2x8x8xf32>
    %38 = arith.truncf %37 : vector<2x8x8xf32> to vector<2x8x8xbf16>
    "tpu.trace_start"() <{level = 10 : i32, message = "bqk,bkd->bqd"}> : () -> ()
    %cst_19 = arith.constant dense<0.000000e+00> : vector<2x8x128xf32>
    %39 = tpu.matmul %38, %24, %cst_19 {dimension_numbers = #tpu.dot_dimension_numbers<[2], [1], [1], [2], [0, 0, 0, 1, 1, 2], [0], [0]>} : vector<2x8x8xbf16>, vector<2x8x128xbf16>, vector<2x8x128xf32> -> vector<2x8x128xf32>
    "tpu.trace_stop"() : () -> ()
    %40 = vector.shape_cast %39 : vector<2x8x128xf32> to vector<16x128xf32>
    %41 = arith.truncf %40 : vector<16x128xf32> to vector<16x128xbf16>
    %c0_20 = arith.constant 0 : index
    %c0_21 = arith.constant 0 : index
    %42 = vector.load %arg8[%c0_20, %c0_21] : memref<128x128xbf16, #tpu.memory_space<vmem>>, vector<128x128xbf16>
    %cst_22 = arith.constant dense<0.000000e+00> : vector<16x128xf32>
    %43 = tpu.matmul %41, %42, %cst_22 {dimension_numbers = #tpu.dot_dimension_numbers<[1], [1], [0], [0], [0, 0, 1, 0], [], []>} : vector<16x128xbf16>, vector<128x128xbf16>, vector<16x128xf32> -> vector<16x128xf32>
    %c0_23 = arith.constant 0 : index
    %c0_24 = arith.constant 0 : index
    %44 = vector.load %arg9[%c0_23, %c0_24] : memref<1x128xf32, #tpu.memory_space<vmem>>, vector<1x128xf32>
    %45 = vector.broadcast %44 : vector<1x128xf32> to vector<16x128xf32>
    %46 = arith.addf %43, %45 : vector<16x128xf32>
    %47 = arith.addf %0, %46 : vector<16x128xf32>
    %c0_25 = arith.constant 0 : index
    %c0_26 = arith.constant 0 : index
    %48 = vector.load %arg10[%c0_25, %c0_26] : memref<1x128xf32, #tpu.memory_space<vmem>>, vector<1x128xf32>
    %c0_27 = arith.constant 0 : index
    %c0_28 = arith.constant 0 : index
    %49 = vector.load %arg11[%c0_27, %c0_28] : memref<1x128xf32, #tpu.memory_space<vmem>>, vector<1x128xf32>
    %cst_29 = arith.constant dense<0.000000e+00> : vector<16xf32>
    %50 = vector.multi_reduction <add>, %47, %cst_29 [1] : vector<16x128xf32> to vector<16xf32>
    %51 = vector.shape_cast %50 : vector<16xf32> to vector<16x1xf32>
    %cst_30 = arith.constant 1.280000e+02 : f32
    %52 = vector.broadcast %cst_30 : f32 to vector<16x1xf32>
    %53 = arith.divf %51, %52 : vector<16x1xf32>
    %54 = vector.broadcast %53 : vector<16x1xf32> to vector<16x128xf32>
    %55 = arith.subf %47, %54 : vector<16x128xf32>
    %56 = arith.mulf %55, %55 : vector<16x128xf32>
    %cst_31 = arith.constant dense<0.000000e+00> : vector<16xf32>
    %57 = vector.multi_reduction <add>, %56, %cst_31 [1] : vector<16x128xf32> to vector<16xf32>
    %58 = vector.shape_cast %57 : vector<16xf32> to vector<16x1xf32>
    %cst_32 = arith.constant 1.280000e+02 : f32
    %59 = vector.broadcast %cst_32 : f32 to vector<16x1xf32>
    %60 = arith.divf %58, %59 : vector<16x1xf32>
    %cst_33 = arith.constant 9.99999974E-6 : f32
    %61 = vector.broadcast %cst_33 : f32 to vector<16x1xf32>
    %62 = arith.addf %60, %61 : vector<16x1xf32>
    %63 = math.rsqrt %62 : vector<16x1xf32>
    %64 = vector.broadcast %63 : vector<16x1xf32> to vector<16x128xf32>
    %65 = arith.mulf %55, %64 : vector<16x128xf32>
    %66 = vector.broadcast %48 : vector<1x128xf32> to vector<16x128xf32>
    %67 = arith.mulf %65, %66 : vector<16x128xf32>
    %68 = vector.broadcast %49 : vector<1x128xf32> to vector<16x128xf32>
    %69 = arith.addf %67, %68 : vector<16x128xf32>
    %70 = arith.truncf %69 : vector<16x128xf32> to vector<16x128xbf16>
    %c0_34 = arith.constant 0 : index
    %c0_35 = arith.constant 0 : index
    %71 = vector.load %arg12[%c0_34, %c0_35] : memref<512x128xbf16, #tpu.memory_space<vmem>>, vector<512x128xbf16>
    %cst_36 = arith.constant dense<0.000000e+00> : vector<16x512xf32>
    %72 = tpu.matmul %70, %71, %cst_36 {dimension_numbers = #tpu.dot_dimension_numbers<[1], [1], [0], [0], [0, 0, 1, 0], [], []>} : vector<16x128xbf16>, vector<512x128xbf16>, vector<16x512xf32> -> vector<16x512xf32>
    %c0_37 = arith.constant 0 : index
    %c0_38 = arith.constant 0 : index
    %73 = vector.load %arg13[%c0_37, %c0_38] : memref<1x512xf32, #tpu.memory_space<vmem>>, vector<1x512xf32>
    %74 = vector.broadcast %73 : vector<1x512xf32> to vector<16x512xf32>
    %75 = arith.addf %72, %74 : vector<16x512xf32>
    %cst_39 = arith.constant 0.000000e+00 : f32
    %76 = vector.broadcast %cst_39 : f32 to vector<16x512xf32>
    %77 = arith.maximumf %75, %76 : vector<16x512xf32>
    %78 = arith.truncf %77 : vector<16x512xf32> to vector<16x512xbf16>
    %c0_40 = arith.constant 0 : index
    %c0_41 = arith.constant 0 : index
    %79 = vector.load %arg14[%c0_40, %c0_41] : memref<128x512xbf16, #tpu.memory_space<vmem>>, vector<128x512xbf16>
    %cst_42 = arith.constant dense<0.000000e+00> : vector<16x128xf32>
    %80 = tpu.matmul %78, %79, %cst_42 {dimension_numbers = #tpu.dot_dimension_numbers<[1], [1], [0], [0], [0, 0, 1, 0], [], []>} : vector<16x512xbf16>, vector<128x512xbf16>, vector<16x128xf32> -> vector<16x128xf32>
    %c0_43 = arith.constant 0 : index
    %c0_44 = arith.constant 0 : index
    %81 = vector.load %arg15[%c0_43, %c0_44] : memref<1x128xf32, #tpu.memory_space<vmem>>, vector<1x128xf32>
    %82 = vector.broadcast %81 : vector<1x128xf32> to vector<16x128xf32>
    %83 = arith.addf %80, %82 : vector<16x128xf32>
    %84 = arith.addf %69, %83 : vector<16x128xf32>
    %c0_45 = arith.constant 0 : index
    %c0_46 = arith.constant 0 : index
    %85 = vector.load %arg16[%c0_45, %c0_46] : memref<1x128xf32, #tpu.memory_space<vmem>>, vector<1x128xf32>
    %c0_47 = arith.constant 0 : index
    %c0_48 = arith.constant 0 : index
    %86 = vector.load %arg17[%c0_47, %c0_48] : memref<1x128xf32, #tpu.memory_space<vmem>>, vector<1x128xf32>
    %cst_49 = arith.constant dense<0.000000e+00> : vector<16xf32>
    %87 = vector.multi_reduction <add>, %84, %cst_49 [1] : vector<16x128xf32> to vector<16xf32>
    %88 = vector.shape_cast %87 : vector<16xf32> to vector<16x1xf32>
    %cst_50 = arith.constant 1.280000e+02 : f32
    %89 = vector.broadcast %cst_50 : f32 to vector<16x1xf32>
    %90 = arith.divf %88, %89 : vector<16x1xf32>
    %91 = vector.broadcast %90 : vector<16x1xf32> to vector<16x128xf32>
    %92 = arith.subf %84, %91 : vector<16x128xf32>
    %93 = arith.mulf %92, %92 : vector<16x128xf32>
    %cst_51 = arith.constant dense<0.000000e+00> : vector<16xf32>
    %94 = vector.multi_reduction <add>, %93, %cst_51 [1] : vector<16x128xf32> to vector<16xf32>
    %95 = vector.shape_cast %94 : vector<16xf32> to vector<16x1xf32>
    %cst_52 = arith.constant 1.280000e+02 : f32
    %96 = vector.broadcast %cst_52 : f32 to vector<16x1xf32>
    %97 = arith.divf %95, %96 : vector<16x1xf32>
    %cst_53 = arith.constant 9.99999974E-6 : f32
    %98 = vector.broadcast %cst_53 : f32 to vector<16x1xf32>
    %99 = arith.addf %97, %98 : vector<16x1xf32>
    %100 = math.rsqrt %99 : vector<16x1xf32>
    %101 = vector.broadcast %100 : vector<16x1xf32> to vector<16x128xf32>
    %102 = arith.mulf %92, %101 : vector<16x128xf32>
    %103 = vector.broadcast %85 : vector<1x128xf32> to vector<16x128xf32>
    %104 = arith.mulf %102, %103 : vector<16x128xf32>
    %105 = vector.broadcast %86 : vector<1x128xf32> to vector<16x128xf32>
    %106 = arith.addf %104, %105 : vector<16x128xf32>
    %c0_54 = arith.constant 0 : index
    %c0_55 = arith.constant 0 : index
    %107 = vector.load %arg18[%c0_54, %c0_55] : memref<16x128xf32, #tpu.memory_space<vmem>>, vector<16x128xf32>
    tpu.vector_store %arg18[%c0_54, %c0_55], %106 {strides = array<i32>} : memref<16x128xf32, #tpu.memory_space<vmem>>, vector<16x128xf32>,
    return
  }
  func.func @transform_0(%arg0: i32) -> (i32, i32) {
    %c0_i32 = arith.constant 0 : i32
    %c0_i32_0 = arith.constant 0 : i32
    %c0_i32_1 = arith.constant 0 : i32
    return %c0_i32, %c0_i32_0 : i32, i32
  }
  func.func @transform_1(%arg0: i32) -> (i32, i32) {
    %c0_i32 = arith.constant 0 : i32
    %c0_i32_0 = arith.constant 0 : i32
    %c0_i32_1 = arith.constant 0 : i32
    return %c0_i32, %c0_i32_0 : i32, i32
  }
  func.func @transform_2(%arg0: i32) -> (i32, i32) {
    %c0_i32 = arith.constant 0 : i32
    %c0_i32_0 = arith.constant 0 : i32
    %c0_i32_1 = arith.constant 0 : i32
    return %c0_i32, %c0_i32_0 : i32, i32
  }
  func.func @transform_3(%arg0: i32) -> (i32, i32) {
    %c0_i32 = arith.constant 0 : i32
    %c0_i32_0 = arith.constant 0 : i32
    %c0_i32_1 = arith.constant 0 : i32
    return %c0_i32, %c0_i32_0 : i32, i32
  }
  func.func @transform_4(%arg0: i32) -> (i32, i32) {
    %c0_i32 = arith.constant 0 : i32
    %c0_i32_0 = arith.constant 0 : i32
    %c0_i32_1 = arith.constant 0 : i32
    return %c0_i32, %c0_i32_0 : i32, i32
  }
  func.func @transform_5(%arg0: i32) -> (i32, i32) {
    %c0_i32 = arith.constant 0 : i32
    %c0_i32_0 = arith.constant 0 : i32
    %c0_i32_1 = arith.constant 0 : i32
    return %c0_i32, %c0_i32_0 : i32, i32
  }
  func.func @transform_6(%arg0: i32) -> (i32, i32) {
    %c0_i32 = arith.constant 0 : i32
    %c0_i32_0 = arith.constant 0 : i32
    %c0_i32_1 = arith.constant 0 : i32
    return %c0_i32, %c0_i32_0 : i32, i32
  }
  func.func @transform_7(%arg0: i32) -> (i32, i32) {
    %c0_i32 = arith.constant 0 : i32
    %c0_i32_0 = arith.constant 0 : i32
    %c0_i32_1 = arith.constant 0 : i32
    return %c0_i32, %c0_i32_0 : i32, i32
  }
  func.func @transform_8(%arg0: i32) -> (i32, i32) {
    %c0_i32 = arith.constant 0 : i32
    %c0_i32_0 = arith.constant 0 : i32
    %c0_i32_1 = arith.constant 0 : i32
    return %c0_i32, %c0_i32_0 : i32, i32
  }
  func.func @transform_9(%arg0: i32) -> (i32, i32) {
    %c0_i32 = arith.constant 0 : i32
    %c0_i32_0 = arith.constant 0 : i32
    %c0_i32_1 = arith.constant 0 : i32
    return %c0_i32, %c0_i32_0 : i32, i32
  }
  func.func @transform_10(%arg0: i32) -> (i32, i32) {
    %c0_i32 = arith.constant 0 : i32
    %c0_i32_0 = arith.constant 0 : i32
    %c0_i32_1 = arith.constant 0 : i32
    return %c0_i32, %c0_i32_0 : i32, i32
  }
  func.func @transform_11(%arg0: i32) -> (i32, i32) {
    %c0_i32 = arith.constant 0 : i32
    %c0_i32_0 = arith.constant 0 : i32
    %c0_i32_1 = arith.constant 0 : i32
    return %c0_i32, %c0_i32_0 : i32, i32
  }
  func.func @transform_12(%arg0: i32) -> (i32, i32) {
    %c0_i32 = arith.constant 0 : i32
    %c0_i32_0 = arith.constant 0 : i32
    %c0_i32_1 = arith.constant 0 : i32
    return %c0_i32, %c0_i32_0 : i32, i32
  }
  func.func @transform_13(%arg0: i32) -> (i32, i32) {
    %c0_i32 = arith.constant 0 : i32
    %c0_i32_0 = arith.constant 0 : i32
    %c0_i32_1 = arith.constant 0 : i32
    return %c0_i32, %c0_i32_0 : i32, i32
  }
  func.func @transform_14(%arg0: i32) -> (i32, i32) {
    %c0_i32 = arith.constant 0 : i32
    %c0_i32_0 = arith.constant 0 : i32
    %c0_i32_1 = arith.constant 0 : i32
    return %c0_i32, %c0_i32_0 : i32, i32
  }
  func.func @transform_15(%arg0: i32) -> (i32, i32) {
    %c0_i32 = arith.constant 0 : i32
    %c0_i32_0 = arith.constant 0 : i32
    %c0_i32_1 = arith.constant 0 : i32
    return %c0_i32, %c0_i32_0 : i32, i32
  }
  func.func @transform_16(%arg0: i32) -> (i32, i32) {
    %c0_i32 = arith.constant 0 : i32
    %c0_i32_0 = arith.constant 0 : i32
    %c0_i32_1 = arith.constant 0 : i32
    return %c0_i32, %c0_i32_0 : i32, i32
  }
  func.func @transform_17(%arg0: i32) -> (i32, i32) {
    %c0_i32 = arith.constant 0 : i32
    %c0_i32_0 = arith.constant 0 : i32
    %c0_i32_1 = arith.constant 0 : i32
    return %c0_i32, %c0_i32_0 : i32, i32
  }
}

</mosaic_0001>

<bundles_post_ra>
// kernel: one_layer_transformer.1
= control target key start
LH: loop header
LB: loop body
LE: loop exit
PB: predicated region body
PF: predicated region fallthrough
CT: control target
= control target key end

     0   :  { %s2533_s0 = inlined_call_operand.vmem [shape: f32[16,128], index: 0, kind: input, shape index: {}]   ;;  %s2534_s1 = inlined_call_operand.vmem [shape: bf16[128,128], index: 1, kind: input, shape index: {}]   ;;  %s2535_s2 = inlined_call_operand.hbm [shape: bf16[128,128], index: 2, kind: input, shape index: {}]   ;;  %s2536_s3 = inlined_call_operand.hbm [shape: bf16[128,128], index: 3, kind: input, shape index: {}]   ;;  %s2537_s4 = inlined_call_operand.vmem [shape: f32[1,128], index: 4, kind: input, shape index: {}]   ;;  %s2538_s5 = inlined_call_operand.vmem [shape: f32[1,128], index: 5, kind: input, shape index: {}]   ;;  %s2539_s6 = inlined_call_operand.vmem [shape: f32[1,128], index: 6, kind: input, shape index: {}]   ;;  %s2540_s7 = inlined_call_operand.hbm [shape: bf16[128,128], index: 7, kind: input, shape index: {}]   ;;  %s2541_s8 = inlined_call_operand.vmem [shape: f32[1,128], index: 8, kind: input, shape index: {}]   ;;  %s2542_s9 = inlined_call_operand.vmem [shape: f32[1,128], index: 9, kind: input, shape index: {}]   ;;  %s2543_s10 = inlined_call_operand.vmem [shape: f32[1,128], index: 10, kind: input, shape index: {}]   ;;  %s2544_s11 = inlined_call_operand.vmem [shape: bf16[512,128], index: 11, kind: input, shape index: {}]   ;;  %s2545_s12 = inlined_call_operand.vmem [shape: f32[1,512], index: 12, kind: input, shape index: {}]   ;;  %s2546_s13 = inlined_call_operand.vmem [shape: bf16[128,512], index: 13, kind: input, shape index: {}]   ;;  %s2547_s14 = inlined_call_operand.vmem [shape: f32[1,128], index: 14, kind: input, shape index: {}]   ;;  %s2548_s15 = inlined_call_operand.vmem [shape: f32[1,128], index: 15, kind: input, shape index: {}]   ;;  %s2549_s16 = inlined_call_operand.vmem [shape: f32[1,128], index: 16, kind: input, shape index: {}]   ;;  %s2550_s17 = inlined_call_operand.hbm [shape: f32[16,128], index: 17, kind: output, shape index: {}]  }
   0x1   :  { %2553 = sst [smem:[#allocation12_spill]] %s2533_s0 }
   0x2   :  { %2554 = sst [smem:[#allocation13_spill]] %s2534_s1 }
   0x3   :  { %22 = vsyncpa [#allocation3], 0 }
   0x4   :  { %23 = vsyncpa [#allocation6], 0 }
   0x5   :  { %24 = vsyncpa [#allocation4], 0  ;;  %s2043_s24 = smov [#allocation5]   ;;  %s2044_s26 = smov [#allocation2]  }
   0x6   :  { %s46_s25 = sshll.u32 %s2043_s24, 4  ;;  %s34_s27 = sshll.u32 %s2044_s26, 4  ;;  %s47_s25 = int_to_ptr.vmem [resolvable:$true] %s46_s25  ;;  %s2143_s27 = int_to_ptr.vmem [resolvable:$true] %s34_s27 }
   0x7   :  { %s1949_s0 = scalar_lea.hbm %s2536_s3, 1024 }
   0x8   :  { %p1950_p0 = scmp.ne.s32.totalorder %s2536_s3, %s1949_s0  ;;  %p1953_p1 = scmp.lt.u32.totalorder %s1949_s0, %s2536_s3 }
   0xa   :  { %p1955_p2 = pnand %p1953_p1, %p1950_p0 }
   0xc   :  { %1958 = shalt.err (!%p1955_p2)
}
   0xd   :  { %s1959_s20 = scalar_lea.vmem %s47_s25, 1024  ;;  %p1964_p4 = scmp.lt.s32.totalorder %s47_s25, %s47_s25 }
   0xe   :  { %p1960_p3 = scmp.ne.s32.totalorder %s47_s25, %s1959_s20  ;;  %p1965_p5 = scmp.lt.s32.totalorder %s1959_s20, %s1959_s20 }
  0x10   :  { %p1966_p6 = por %p1965_p5, %p1964_p4 }
  0x12   :  { %p1967_p7 = pnand %p1966_p6, %p1960_p3 }
  0x14   :  { %1970 = shalt.err (!%p1967_p7)
}
  0x15   :  { %s2045_s21 = smov 64   ;;  %s2046_s22 = smov 4  }
  0x16   :  { %52 = dma.hbm_to_vmem [thread:$0]  %s2536_s3, 1024, %s47_s25, [#allocation6], %s2045_s21, %s2045_s21, %s2046_s22  }
  0x17   :  { %s1971_s29 = scalar_lea.hbm %s2535_s2, 1024 }
  0x18   :  { %p1972_p8 = scmp.ne.s32.totalorder %s2535_s2, %s1971_s29  ;;  %p1975_p9 = scmp.lt.u32.totalorder %s1971_s29, %s2535_s2 }
  0x1a   :  { %p1977_p10 = pnand %p1975_p9, %p1972_p8 }
  0x1c   :  { %1980 = shalt.err (!%p1977_p10)
}
  0x1d   :  { %s1981_s1 = scalar_lea.vmem %s2143_s27, 1024  ;;  %p1986_p12 = scmp.lt.s32.totalorder %s2143_s27, %s2143_s27 }
  0x1e   :  { %p1982_p11 = scmp.ne.s32.totalorder %s2143_s27, %s1981_s1  ;;  %p1987_p13 = scmp.lt.s32.totalorder %s1981_s1, %s1981_s1 }
  0x20   :  { %p1988_p0 = por %p1987_p13, %p1986_p12 }
  0x22   :  { %p1989_p1 = pnand %p1988_p0, %p1982_p11 }
  0x24   :  { %1992 = shalt.err (!%p1989_p1)
}
  0x25   :  { %40 = dma.hbm_to_vmem [thread:$0]  %s2535_s2, 1024, %s2143_s27, [#allocation3], %s2045_s21, %s2045_s21, %s2046_s22  }
  0x26   :  { %s2047_s20 = smov [#allocation7]   ;;  %s1993_s28 = scalar_lea.hbm %s2540_s7, 1024 }
  0x27   :  { %s64_s23 = sshll.u32 %s2047_s20, 4  ;;  %p1994_p2 = scmp.ne.s32.totalorder %s2540_s7, %s1993_s28  ;;  %s65_s23 = int_to_ptr.vmem [resolvable:$true] %s64_s23 }
  0x28   :  { %p1997_p3 = scmp.lt.u32.totalorder %s1993_s28, %s2540_s7 }
  0x2a   :  { %p1999_p4 = pnand %p1997_p3, %p1994_p2 }
  0x2c   :  { %2002 = shalt.err (!%p1999_p4)
}
  0x2d   :  { %s2003_s19 = scalar_lea.vmem %s65_s23, 1024  ;;  %p2008_p6 = scmp.lt.s32.totalorder %s65_s23, %s65_s23 }
  0x2e   :  { %p2004_p5 = scmp.ne.s32.totalorder %s65_s23, %s2003_s19  ;;  %p2009_p7 = scmp.lt.s32.totalorder %s2003_s19, %s2003_s19 }
  0x30   :  { %p2010_p8 = por %p2009_p7, %p2008_p6 }
  0x32   :  { %p2011_p9 = pnand %p2010_p8, %p2004_p5 }
  0x34   :  { %2014 = shalt.err (!%p2011_p9)
}
  0x35   :  { %70 = dma.hbm_to_vmem [thread:$0]  %s2540_s7, 1024, %s65_s23, [#allocation6], %s2045_s21, %s2045_s21, %s2046_s22  }
  0x36   :  { %2037 = dma.done.wait [#allocation3], 1024  }
  0x37   :  { %2038 = vsyncadd [#allocation3], 4294966272 }
  0x38   :  { %2039 = dma.done.wait [#allocation6], 2048  }
  0x39   :  { %2040 = vsyncadd [#allocation6], 4294965248  ;;  %v2048_v0 = vmov 0.0   ;;  %vm2049_vm0 = vmmov 0   ;;  %v1821_v1 = vld [vmem:[#allocation2] sm:$0xff]   ;;  %s2555_s7 = sld [smem:[#allocation13_spill]] }
  0x3a   :  { %1727 = vmatprep.subr.bf16.mxu1 %v2048_v0  ;;  %1707 = vmatprep.subr.bf16.mxu0 %v2048_v0  ;;  %v1823_v3 = vld [vmem:[#allocation2 + $0x8] sm:$0xff]   ;;  %v1825_v5 = vld [vmem:[#allocation2 + $0x10] sm:$0xff]   ;;  %v1827_v7 = vld [vmem:[#allocation2 + $0x18] sm:$0xff]   ;;  %s2556_s3 = sld [smem:[#allocation12_spill]]  ;;  %vm554_vm1 = vcmask 1043456   ;;  %vm526_vm2 = vcmask 64512  }
  0x3b   :  { %1743 = vmatprep.mubr.msk.bf16.mxu1 %vm2049_vm0, %v2048_v0  ;;  %1723 = vmatprep.mubr.msk.bf16.mxu0 %vm2049_vm0, %v2048_v0  ;;  %v1829_v9 = vld [vmem:[#allocation2 + $0x20] sm:$0xff]   ;;  %v1831_v11 = vld [vmem:[#allocation2 + $0x28] sm:$0xff]   ;;  %v1833_v13 = vld [vmem:[#allocation2 + $0x30] sm:$0xff]  }
  0x3c   :  { %1728 = vmatpush3.bf16.xpose.msra.mxu1 %v1821_v1  ;;  %v1835_v15 = vld [vmem:[#allocation2 + $0x38] sm:$0xff]   ;;  %v1837_v20 = vld [vmem:[#allocation5] sm:$0xff]   ;;  %v1838_v21 = vld [vmem:[#allocation5 + $0x8] sm:$0xff]  }
  0x3d   :  { %1729 = vmatprep.subr.bf16.mxu1 %v2048_v0  ;;  %v1839_v22 = vld [vmem:[#allocation5 + $0x10] sm:$0xff]   ;;  %v1840_v23 = vld [vmem:[#allocation5 + $0x18] sm:$0xff]   ;;  %v1841_v24 = vld [vmem:[#allocation5 + $0x20] sm:$0xff]  }
  0x3e   :  { %v1842_v25 = vld [vmem:[#allocation5 + $0x28] sm:$0xff]   ;;  %v1843_v26 = vld [vmem:[#allocation5 + $0x30] sm:$0xff]   ;;  %v1844_v27 = vld [vmem:[#allocation5 + $0x38] sm:$0xff]  }
  0x3f   :  { %v1822_v2 = vld [vmem:[%s2555_s7] sm:$0xff]   ;;  %v1824_v4 = vld [vmem:[%s2555_s7 + $0x8] sm:$0xff]   ;;  %v1826_v6 = vld [vmem:[%s2555_s7 + $0x10] sm:$0xff]  }
  0x40   :  { %1708 = vmatpush3.bf16.xpose.msra.mxu0 %v1822_v2  ;;  %v1828_v8 = vld [vmem:[%s2555_s7 + $0x18] sm:$0xff]   ;;  %v1830_v10 = vld [vmem:[%s2555_s7 + $0x20] sm:$0xff]   ;;  %v1832_v12 = vld [vmem:[%s2555_s7 + $0x28] sm:$0xff]  }
  0x41   :  { %1709 = vmatprep.subr.bf16.mxu0 %v2048_v0  ;;  %v1834_v14 = vld [vmem:[%s2555_s7 + $0x30] sm:$0xff]   ;;  %v1836_v16 = vld [vmem:[%s2555_s7 + $0x38] sm:$0xff]   ;;  %v2242_v17 = vld [vmem:[%s2556_s3] sm:$0xff] }
  0x42   :  { %v2247_v18 = vld [vmem:[%s2556_s3 + $0x8] sm:$0xff]  ;;  %v1529_v28 = vld [vmem:[%s2538_s5] ss:$0 sm:$0xff] }
  0x43   :  { %v101_v19 = vpack.c.bf16 %v2247_v18, %v2242_v17  ;;  %v1520_v32 = vld [vmem:[%s2537_s4] ss:$0 sm:$0xff]  ;;  %s2050_s4 = smov [#allocation8]  }
  0x44   :  { %1730 = vmatpush3.bf16.xpose.msra.mxu1 %v1823_v3  ;;  %v1538_v46 = vld [vmem:[%s2539_s6] ss:$0 sm:$0xff]  ;;  %s1507_s5 = sshll.u32 %s2050_s4, 4  ;;  %s1508_s5 = int_to_ptr.vmem [resolvable:$true] %s1507_s5 }
  0x45   :  { %1731 = vmatprep.subr.bf16.mxu1 %v2048_v0  ;;  %s2015_s6 = scalar_lea.vmem %s1508_s5, 256  ;;  %p2020_p11 = scmp.lt.s32.totalorder %s1508_s5, %s1508_s5 }
  0x46   :  { %p2016_p10 = scmp.ne.s32.totalorder %s1508_s5, %s2015_s6  ;;  %p2021_p12 = scmp.lt.s32.totalorder %s2015_s6, %s2015_s6 }
  0x48   :  { %1710 = vmatpush3.bf16.xpose.msra.mxu0 %v1824_v4  ;;  %p2022_p13 = por %p2021_p12, %p2020_p11 }
  0x49   :  { %1711 = vmatprep.subr.bf16.mxu0 %v2048_v0 }
  0x4a   :  { %p2023_p0 = pnand %p2022_p13, %p2016_p10 }
  0x4c   :  { %1732 = vmatpush3.bf16.xpose.msra.mxu1 %v1825_v5 }
  0x4d   :  { %1733 = vmatprep.subr.bf16.mxu1 %v2048_v0 }
  0x50   :  { %1712 = vmatpush3.bf16.xpose.msra.mxu0 %v1826_v6 }
  0x51   :  { %1713 = vmatprep.subr.bf16.mxu0 %v2048_v0 }
  0x54   :  { %1734 = vmatpush3.bf16.xpose.msra.mxu1 %v1827_v7 }
  0x55   :  { %1735 = vmatprep.subr.bf16.mxu1 %v2048_v0 }
  0x58   :  { %1714 = vmatpush3.bf16.xpose.msra.mxu0 %v1828_v8 }
  0x59   :  { %1715 = vmatprep.subr.bf16.mxu0 %v2048_v0 }
  0x5c   :  { %1736 = vmatpush3.bf16.xpose.msra.mxu1 %v1829_v9 }
  0x5d   :  { %1737 = vmatprep.subr.bf16.mxu1 %v2048_v0 }
  0x60   :  { %1716 = vmatpush3.bf16.xpose.msra.mxu0 %v1830_v10 }
  0x61   :  { %1717 = vmatprep.subr.bf16.mxu0 %v2048_v0 }
  0x64   :  { %1738 = vmatpush3.bf16.xpose.msra.mxu1 %v1831_v11 }
  0x65   :  { %1739 = vmatprep.subr.bf16.mxu1 %v2048_v0 }
  0x68   :  { %1718 = vmatpush3.bf16.xpose.msra.mxu0 %v1832_v12 }
  0x69   :  { %1719 = vmatprep.subr.bf16.mxu0 %v2048_v0 }
  0x6c   :  { %1740 = vmatpush3.bf16.xpose.msra.mxu1 %v1833_v13 }
  0x6d   :  { %1741 = vmatprep.subr.bf16.mxu1 %v2048_v0 }
  0x70   :  { %1720 = vmatpush3.bf16.xpose.msra.mxu0 %v1834_v14 }
  0x71   :  { %1721 = vmatprep.subr.bf16.mxu0 %v2048_v0 }
  0x74   :  { %1742 = vmatpush3.bf16.xpose.msra.mxu1 %v1835_v15 }
  0x75   :  { %1779 = vmatprep.subr.bf16.mxu1 %v2048_v0 }
  0x78   :  { %1722 = vmatpush3.bf16.xpose.msra.mxu0 %v1836_v16 }
  0x79   :  { %1747 = vmatprep.subr.bf16.mxu0 %v2048_v0 }
  0x7b   :  { %1744 = vmatmul.mubr.bf16.vlgmr.msra.gmra.mrb[0].mxu1 %v101_v19 }
  0x7c   :  { %1781 = vmatprep.mubr.msk.bf16.mxu1 %vm2049_vm0, %v2048_v0 }
  0x7f   :  { %1724 = vmatmul.mubr.bf16.vlgmr.msra.gmra.mrb[0].mxu0 %v101_v19 }
  0x80   :  { %1748 = vmatpush3.bf16.xpose.msra.mxu0 %v1837_v20  ;;  %1763 = vmatprep.mubr.msk.bf16.mxu0 %vm2049_vm0, %v2048_v0 }
  0x81   :  { %1749 = vmatprep.subr.bf16.mxu0 %v2048_v0 }
  0x88   :  { %1750 = vmatpush3.bf16.xpose.msra.mxu0 %v1838_v21 }
  0x89   :  { %1751 = vmatprep.subr.bf16.mxu0 %v2048_v0 }
  0x90   :  { %1752 = vmatpush3.bf16.xpose.msra.mxu0 %v1839_v22 }
  0x91   :  { %1753 = vmatprep.subr.bf16.mxu0 %v2048_v0 }
  0x98   :  { %1754 = vmatpush3.bf16.xpose.msra.mxu0 %v1840_v23 }
  0x99   :  { %1755 = vmatprep.subr.bf16.mxu0 %v2048_v0 }
  0xa0   :  { %1756 = vmatpush3.bf16.xpose.msra.mxu0 %v1841_v24 }
  0xa1   :  { %1757 = vmatprep.subr.bf16.mxu0 %v2048_v0 }
  0xa8   :  { %1758 = vmatpush3.bf16.xpose.msra.mxu0 %v1842_v25 }
  0xa9   :  { %1759 = vmatprep.subr.bf16.mxu0 %v2048_v0 }
  0xb0   :  { %1760 = vmatpush3.bf16.xpose.msra.mxu0 %v1843_v26  ;;  %v1845_v26 = vld [vmem:[#allocation7] sm:$0xff]  }
  0xb1   :  { %1761 = vmatprep.subr.bf16.mxu0 %v2048_v0 }
  0xb8   :  { %1762 = vmatpush3.bf16.xpose.msra.mxu0 %v1844_v27  ;;  %v1846_v27 = vld [vmem:[#allocation7 + $0x8] sm:$0xff]  }
  0xb9   :  { %1767 = vmatprep.subr.bf16.mxu0 %v2048_v0 }
  0xbf   :  { %1764 = vmatmul.mubr.bf16.vlgmr.msra.gmra.mrb[4].mxu0 %v101_v19 }
  0xc0   :  { %1769 = vmatprep.mubr.msk.bf16.mxu0 %vm2049_vm0, %v2048_v0 }
 0x14e   :  { %v319_v29 = vpop.f32.mrb[0].mxu1 }
 0x14f   :  { %v320_v30 = vadd.f32 %v1529_v28, %v319_v29  ;;  %v1745_v31 = vpop.f32.mrb[1].mxu1  ;;  %v1848_v29 = vld [vmem:[#allocation7 + $0x18] sm:$0xff]  }
 0x150   :  { %v322_v34 = vpop.f32.mrb[2].mxu1  ;;  %v1850_v31 = vld [vmem:[#allocation7 + $0x28] sm:$0xff]  }
 0x151   :  { %v440_v36 = vpack.c.bf16 %v320_v30, %v320_v30  ;;  %v1746_v37 = vpop.f32.mrb[3].mxu1  ;;  %v323_v41 = vadd.f32 %v1529_v28, %v322_v34  ;;  %v1847_v28 = vld [vmem:[#allocation7 + $0x10] sm:$0xff]   ;;  %v1849_v30 = vld [vmem:[#allocation7 + $0x20] sm:$0xff]  }
 0x152   :  { %v207_v33 = vpop.f32.mrb[0].mxu0 }
 0x153   :  { %v1725_v35 = vpop.f32.mrb[1].mxu0  ;;  %v208_v39 = vadd.f32 %v1520_v32, %v207_v33  ;;  %1768 = vmatpush3.bf16.xpose.msra.mxu0 %v440_v36  ;;  %v441_v43 = vpack.c.bf16 %v323_v41, %v323_v41  ;;  %v1852_v33 = vld [vmem:[#allocation7 + $0x38] sm:$0xff]  }
 0x154   :  { %v210_v38 = vpop.f32.mrb[2].mxu0  ;;  %1773 = vmatprep.subr.bf16.mxu0 %v2048_v0 }
 0x155   :  { %v1726_v40 = vpop.f32.mrb[3].mxu0  ;;  %v438_v42 = vpack.c.bf16 %v208_v39, %v208_v39  ;;  %v211_v44 = vadd.f32 %v1520_v32, %v210_v38  ;;  %v1851_v32 = vld [vmem:[#allocation7 + $0x30] sm:$0xff]  }
 0x157   :  { %v439_v45 = vpack.c.bf16 %v211_v44, %v211_v44 }
 0x15a   :  { %1770 = vmatmul.mubr.bf16.vlgmr.msra.gmra.mrb[8].mxu0 %v438_v42 }
 0x15b   :  { %1774 = vmatpush3.bf16.xpose.msra.mxu0 %v441_v43  ;;  %1775 = vmatprep.mubr.msk.bf16.mxu0 %vm2049_vm0, %v2048_v0  ;;  %v1549_v43 = vld [vmem:[%s2541_s8] ss:$0 sm:$0xff] }
 0x162   :  { %1776 = vmatmul.mubr.bf16.vlgmr.msra.gmra.mrb[12].mxu0 %v439_v45 }
 0x192   :  { %v431_v47 = vpop.f32.mrb[4].mxu0 }
 0x193   :  { %v432_v48 = vadd.f32 %v1538_v46, %v431_v47  ;;  %v1765_v49 = vpop.f32.mrb[5].mxu0 }
 0x194   :  { %v434_v50 = vpop.f32.mrb[6].mxu0 }
 0x195   :  { %v442_v51 = vpack.c.bf16 %v432_v48, %v432_v48  ;;  %v435_v52 = vadd.f32 %v1538_v46, %v434_v50  ;;  %v1766_v53 = vpop.f32.mrb[7].mxu0 }
 0x196   :  { %v1855_v53 = vld [vmem:[%s2544_s11] sm:$0xff]  }
 0x197   :  { %v556_v54 = vsel %vm554_vm1, %v442_v51, 0  ;;  %v443_v55 = vpack.c.bf16 %v435_v52, %v435_v52  ;;  %v1853_v51 = vld [vmem:[%s2544_s11 + $0x40] sm:$0xff]  }
 0x198   :  { %1780 = vmatpush3.bf16.msra.mxu1 %v556_v54  ;;  %v1854_v52 = vld [vmem:[%s2544_s11 + $0xc0] sm:$0xff]   ;;  %v1858_v54 = vld [vmem:[%s2544_s11 + $0xc8] sm:$0xff]   ;;  %1671 = vmatprep.subr.bf16.mxu0 %v1853_v51 }
 0x199   :  { %v602_v56 = vsel %vm554_vm1, %v443_v55, 0  ;;  %1785 = vmatprep.subr.bf16.mxu1 %v2048_v0  ;;  %1672 = vmatpush3.bf16.xpose.msra.mxu0 %v1855_v53  ;;  %v1859_v55 = vld [vmem:[%s2544_s11 + $0x8] sm:$0xff]  }
 0x19a   :  { %v1894_v51 = vld [vmem:[%s2546_s13 + $0x28] ss:$16 sps:$4 sm:$0xff]   ;;  %v1902_v53 = vld [vmem:[%s2546_s13 + $0x4c] ss:$16 sps:$4 sm:$0xff]  }
 0x22d   :  { %v478_v57 = vpop.f32.mrb[8].mxu0 }
 0x22e   :  { %v524_v58 = vmul.f32 0.088388346, %v478_v57  ;;  %v1771_v59 = vpop.f32.mrb[9].mxu0  ;;  %v1861_v57 = vld [vmem:[%s2544_s11 + $0x50] sm:$0xff]  }
 0x22f   :  { %v481_v60 = vpop.f32.mrb[10].mxu0  ;;  %v1863_v59 = vld [vmem:[%s2544_s11 + $0x10] sm:$0xff]  }
 0x230   :  { %v1772_v61 = vpop.f32.mrb[11].mxu0  ;;  %v527_v62 = vsel %vm526_vm2, %v524_v58, -inf  ;;  %v1864_v60 = vld [vmem:[%s2544_s11 + $0x90] sm:$0xff]  }
 0x231   :  { %528 = vmax.xlane.f32.xlu0 %v527_v62  ;;  %v1865_v61 = vld [vmem:[%s2544_s11 + $0x58] sm:$0xff]  }
 0x232   :  { %v1866_v62 = vld [vmem:[%s2544_s11 + $0xd8] sm:$0xff]  }
 0x235   :  { %v518_v63 = vpop.f32.mrb[12].mxu0 }
 0x236   :  { %v525_v1 = vmul.f32 0.088388346, %v518_v63  ;;  %v1777_v2 = vpop.f32.mrb[13].mxu0  ;;  %v1867_v63 = vld [vmem:[%s2544_s11 + $0x18] sm:$0xff]  }
 0x237   :  { %v521_v3 = vpop.f32.mrb[14].mxu0  ;;  %v1869_v2 = vld [vmem:[%s2544_s11 + $0x60] sm:$0xff]  }
 0x238   :  { %v1778_v4 = vpop.f32.mrb[15].mxu0  ;;  %v530_v5 = vsel %vm526_vm2, %v525_v1, -inf  ;;  %v1870_v3 = vld [vmem:[%s2544_s11 + $0xe0] sm:$0xff]  }
 0x239   :  { %531 = vmax.xlane.f32.xlu0 %v530_v5  ;;  %v1871_v4 = vld [vmem:[%s2544_s11 + $0x20] sm:$0xff]  }
 0x23a   :  { %v1872_v5 = vld [vmem:[%s2544_s11 + $0xa0] sm:$0xff]  }
 0x2be   :  { %v529_v6 = vpop.xlane.xlu0 %528 }
 0x2bf   :  { %v533_v7 = vsub.f32 %v524_v58, %v529_v6  ;;  %v1862_v58 = vld [vmem:[%s2544_s11 + $0xd0] sm:$0xff]  }
 0x2c1   :  { %v535_v8 = vmul.f32 1.442695, %v533_v7 }
 0x2c3   :  { %1933 = vpow2.f32 %v535_v8 }
 0x2c6   :  { %v532_v9 = vpop.xlane.xlu0 %531 }
 0x2c7   :  { %v534_v10 = vsub.f32 %v525_v1, %v532_v9  ;;  %v1868_v1 = vld [vmem:[%s2544_s11 + $0x98] sm:$0xff]  }
 0x2c9   :  { %v537_v11 = vmul.f32 1.442695, %v534_v10 }
 0x2cb   :  { %1935 = vpow2.f32 %v537_v11 }
 0x2cd   :  { %v1934_v12 = vpop.eup %1933 }
 0x2ce   :  { %v539_v13 = vsel %vm526_vm2, %v1934_v12, 0.0 }
 0x2cf   :  { %540 = vadd.xlane.f32.xlu1 %v539_v13 }
 0x2d5   :  { %v1936_v14 = vpop.eup %1935 }
 0x2d6   :  { %v542_v15 = vsel %vm526_vm2, %v1936_v14, 0.0 }
 0x2d7   :  { %543 = vadd.xlane.f32.xlu1 %v542_v15  ;;  %v1874_v15 = vld [vmem:[%s2544_s11 + $0xe8] sm:$0xff]  }
 0x35c   :  { %v541_v16 = vpop.xlane.xlu1 %540 }
 0x35d   :  { %1937 = vrcp.f32 %v541_v16  ;;  %v1875_v16 = vld [vmem:[%s2544_s11 + $0x28] sm:$0xff]  }
 0x364   :  { %v544_v19 = vpop.xlane.xlu1 %543 }
 0x365   :  { %1939 = vrcp.f32 %v544_v19  ;;  %v1876_v19 = vld [vmem:[%s2544_s11 + $0xa8] sm:$0xff]  }
 0x367   :  { %v1938_v20 = vpop.eup %1937 }
 0x368   :  { %v547_v21 = vmul.f32 %v1938_v20, %v1934_v12  ;;  %v1877_v20 = vld [vmem:[%s2544_s11 + $0x70] sm:$0xff]  }
 0x36a   :  { %v549_v22 = vpack.c.bf16 %v547_v21, %v547_v21  ;;  %v1878_v21 = vld [vmem:[%s2544_s11 + $0xf0] sm:$0xff]  }
 0x36c   :  { %1782 = vmatmul.mubr.msk.bf16.vlgmr.msra.gmra.mrb[4].mxu1 %vm526_vm2, %v549_v22  ;;  %v1879_v22 = vld [vmem:[%s2544_s11 + $0x30] sm:$0xff]  }
 0x36d   :  { %1786 = vmatpush3.bf16.msra.mxu1 %v602_v56  ;;  %1787 = vmatprep.mubr.msk.bf16.mxu1 %vm2049_vm0, %v2048_v0  ;;  %v1860_v56 = vld [vmem:[%s2544_s11 + $0x88] sm:$0xff]  }
 0x36e   :  { %1791 = vmatprep.subr.bf16.mxu1 %v2048_v0 }
 0x36f   :  { %v1940_v23 = vpop.eup %1939 }
 0x370   :  { %v548_v24 = vmul.f32 %v1940_v23, %v1936_v14  ;;  %v1873_v14 = vld [vmem:[%s2544_s11 + $0x68] sm:$0xff]   ;;  %v1880_v23 = vld [vmem:[%s2544_s11 + $0xb0] sm:$0xff]  }
 0x372   :  { %v550_v25 = vpack.c.bf16 %v548_v24, %v548_v24  ;;  %v1881_v24 = vld [vmem:[%s2544_s11 + $0x78] sm:$0xff]  }
 0x374   :  { %1788 = vmatmul.mubr.msk.bf16.vlgmr.msra.gmra.mrb[8].mxu1 %vm526_vm2, %v550_v25  ;;  %v1882_v25 = vld [vmem:[%s2544_s11 + $0xf8] sm:$0xff]  }
 0x375   :  { %1807 = vmatprep.mubr.msk.bf16.mxu1 %vm2049_vm0, %v2048_v0 }
 0x376   :  { %1792 = vmatpush3.bf16.xpose.msra.mxu1 %v1845_v26  ;;  %v1883_v26 = vld [vmem:[%s2544_s11 + $0x38] sm:$0xff]  }
 0x377   :  { %1793 = vmatprep.subr.bf16.mxu1 %v2048_v0 }
 0x37e   :  { %1794 = vmatpush3.bf16.xpose.msra.mxu1 %v1846_v27  ;;  %v1884_v27 = vld [vmem:[%s2544_s11 + $0xb8] sm:$0xff]  }
 0x37f   :  { %1795 = vmatprep.subr.bf16.mxu1 %v2048_v0 }
 0x386   :  { %1796 = vmatpush3.bf16.xpose.msra.mxu1 %v1847_v28  ;;  %v1887_v28 = vld [vmem:[%s2546_s13 + $0x4] ss:$16 sps:$4 sm:$0xff]  }
 0x387   :  { %1797 = vmatprep.subr.bf16.mxu1 %v2048_v0 }
 0x38e   :  { %1798 = vmatpush3.bf16.xpose.msra.mxu1 %v1848_v29  ;;  %v1890_v29 = vld [vmem:[%s2546_s13 + $0xc] ss:$16 sps:$4 sm:$0xff]  }
 0x38f   :  { %1799 = vmatprep.subr.bf16.mxu1 %v2048_v0 }
 0x396   :  { %1800 = vmatpush3.bf16.xpose.msra.mxu1 %v1849_v30 }
 0x397   :  { %1801 = vmatprep.subr.bf16.mxu1 %v2048_v0 }
 0x39e   :  { %1802 = vmatpush3.bf16.xpose.msra.mxu1 %v1850_v31 }
 0x39f   :  { %1803 = vmatprep.subr.bf16.mxu1 %v2048_v0 }
 0x3a6   :  { %1804 = vmatpush3.bf16.xpose.msra.mxu1 %v1851_v32 }
 0x3a7   :  { %1805 = vmatprep.subr.bf16.mxu1 %v2048_v0 }
 0x3ae   :  { %1806 = vmatpush3.bf16.xpose.msra.mxu1 %v1852_v33 }
 0x3af   :  { %1689 = vmatprep.subr.bf16.mxu1 %v1854_v52  ;;  %v1899_v52 = vld [vmem:[%s2546_s13 + $0x44] ss:$16 sps:$4 sm:$0xff]  }
 0x43f   :  { %v592_v34 = vpop.f32.mrb[4].mxu1 }
 0x440   :  { %v1783_v35 = vpop.f32.mrb[5].mxu1 }
 0x441   :  { %v595_v36 = vpop.f32.mrb[6].mxu1 }
 0x442   :  { %v1784_v37 = vpop.f32.mrb[7].mxu1 }
 0x443   :  { %v1558_v37 = vld [vmem:[%s2542_s9] ss:$0 sm:$0xff] }
 0x447   :  { %v638_v38 = vpop.f32.mrb[8].mxu1 }
 0x448   :  { %v644_v39 = vpack.c.bf16 %v638_v38, %v592_v34  ;;  %v1789_v40 = vpop.f32.mrb[9].mxu1 }
 0x449   :  { %v641_v41 = vpop.f32.mrb[10].mxu1 }
 0x44a   :  { %v1790_v42 = vpop.f32.mrb[11].mxu1  ;;  %1808 = vmatmul.mubr.bf16.vlgmr.msra.gmra.mrb[12].mxu1 %v644_v39 }
 0x44b   :  { %v1559_v42 = vld [vmem:[%s2543_s10] ss:$0 sm:$0xff] }
 0x51d   :  { %v750_v44 = vpop.f32.mrb[12].mxu1 }
 0x51e   :  { %v751_v45 = vadd.f32 %v1549_v43, %v750_v44  ;;  %v1809_v46 = vpop.f32.mrb[13].mxu1 }
 0x51f   :  { %v753_v0 = vpop.f32.mrb[14].mxu1 }
 0x520   :  { %v754_v47 = vadd.f32 %v1549_v43, %v753_v0  ;;  %v1810_v48 = vpop.f32.mrb[15].mxu1  ;;  %v757_v49 = vadd.f32 %v751_v45, %v2242_v17  ;;  %v1856_v17 = vld [vmem:[%s2544_s11 + $0x80] sm:$0xff]  }
 0x521   :  { %1690 = vmatpush3.bf16.xpose.msra.mxu1 %v1856_v17  ;;  %v1885_v0 = vld [vmem:[%s2546_s13] ss:$16 sps:$4 sm:$0xff]   ;;  %v1893_v48 = vld [vmem:[%s2546_s13 + $0x24] ss:$16 sps:$4 sm:$0xff]  }
 0x522   :  { %761 = vadd.xlane.f32.xlu0 %v757_v49  ;;  %v758_v50 = vadd.f32 %v754_v47, %v2247_v18  ;;  %v1857_v18 = vld [vmem:[%s2544_s11 + $0x48] sm:$0xff]   ;;  %1691 = vmatprep.subr.bf16.mxu1 %v1858_v54  ;;  %v1897_v17 = vld [vmem:[%s2546_s13 + $0x40] ss:$16 sps:$4 sm:$0xff]   ;;  %v1905_v54 = vld [vmem:[%s2546_s13 + $0x64] ss:$16 sps:$4 sm:$0xff]  }
 0x523   :  { %1673 = vmatprep.subr.bf16.mxu0 %v1857_v18  ;;  %v1888_v47 = vld [vmem:[%s2546_s13 + $0x8] ss:$16 sps:$4 sm:$0xff]  }
 0x524   :  { %763 = vadd.xlane.f32.xlu1 %v758_v50  ;;  %1674 = vmatpush3.bf16.xpose.msra.mxu0 %v1859_v55  ;;  %v1900_v18 = vld [vmem:[%s2546_s13 + $0x48] ss:$16 sps:$4 sm:$0xff]   ;;  %v1908_v55 = vld [vmem:[%s2546_s13 + $0x6c] ss:$16 sps:$4 sm:$0xff]  }
 0x525   :  { %1675 = vmatprep.subr.bf16.mxu0 %v1861_v57  ;;  %v1906_v57 = vld [vmem:[%s2546_s13 + $0x68] ss:$16 sps:$4 sm:$0xff]  }
 0x529   :  { %1692 = vmatpush3.bf16.xpose.msra.mxu1 %v1860_v56  ;;  %v1903_v56 = vld [vmem:[%s2546_s13 + $0x60] ss:$16 sps:$4 sm:$0xff]  }
 0x52a   :  { %1693 = vmatprep.subr.bf16.mxu1 %v1862_v58  ;;  %v1911_v58 = vld [vmem:[%s2546_s13 + $0x84] ss:$16 sps:$4 sm:$0xff]  }
 0x52c   :  { %1676 = vmatpush3.bf16.xpose.msra.mxu0 %v1863_v59  ;;  %v1914_v59 = vld [vmem:[%s2546_s13 + $0x8c] ss:$16 sps:$4 sm:$0xff]  }
 0x52d   :  { %1677 = vmatprep.subr.bf16.mxu0 %v1865_v61  ;;  %v1912_v61 = vld [vmem:[%s2546_s13 + $0x88] ss:$16 sps:$4 sm:$0xff]  }
 0x531   :  { %1694 = vmatpush3.bf16.xpose.msra.mxu1 %v1864_v60  ;;  %v1909_v60 = vld [vmem:[%s2546_s13 + $0x80] ss:$16 sps:$4 sm:$0xff]  }
 0x532   :  { %1695 = vmatprep.subr.bf16.mxu1 %v1866_v62  ;;  %v1917_v62 = vld [vmem:[%s2546_s13 + $0xa4] ss:$16 sps:$4 sm:$0xff]  }
 0x534   :  { %1678 = vmatpush3.bf16.xpose.msra.mxu0 %v1867_v63  ;;  %v1920_v63 = vld [vmem:[%s2546_s13 + $0xac] ss:$16 sps:$4 sm:$0xff]  }
 0x535   :  { %1679 = vmatprep.subr.bf16.mxu0 %v1869_v2  ;;  %v1918_v2 = vld [vmem:[%s2546_s13 + $0xa8] ss:$16 sps:$4 sm:$0xff]  }
 0x539   :  { %1696 = vmatpush3.bf16.xpose.msra.mxu1 %v1868_v1  ;;  %v1915_v1 = vld [vmem:[%s2546_s13 + $0xa0] ss:$16 sps:$4 sm:$0xff]  }
 0x53a   :  { %1697 = vmatprep.subr.bf16.mxu1 %v1870_v3  ;;  %v1923_v3 = vld [vmem:[%s2546_s13 + $0xc4] ss:$16 sps:$4 sm:$0xff]  }
 0x53c   :  { %1680 = vmatpush3.bf16.xpose.msra.mxu0 %v1871_v4  ;;  %v1926_v4 = vld [vmem:[%s2546_s13 + $0xcc] ss:$16 sps:$4 sm:$0xff]  }
 0x53d   :  { %1681 = vmatprep.subr.bf16.mxu0 %v1873_v14 }
 0x541   :  { %1698 = vmatpush3.bf16.xpose.msra.mxu1 %v1872_v5  ;;  %v1921_v5 = vld [vmem:[%s2546_s13 + $0xc0] ss:$16 sps:$4 sm:$0xff]  }
 0x542   :  { %1699 = vmatprep.subr.bf16.mxu1 %v1874_v15  ;;  %v865_v15 = vld [vmem:[%s2545_s12] sm:$0xf] }
 0x544   :  { %1682 = vmatpush3.bf16.xpose.msra.mxu0 %v1875_v16 }
 0x545   :  { %1683 = vmatprep.subr.bf16.mxu0 %v1877_v20 }
 0x549   :  { %1700 = vmatpush3.bf16.xpose.msra.mxu1 %v1876_v19 }
 0x54a   :  { %1701 = vmatprep.subr.bf16.mxu1 %v1878_v21 }
 0x54c   :  { %1684 = vmatpush3.bf16.xpose.msra.mxu0 %v1879_v22 }
 0x54d   :  { %1685 = vmatprep.subr.bf16.mxu0 %v1881_v24 }
 0x551   :  { %1702 = vmatpush3.bf16.xpose.msra.mxu1 %v1880_v23 }
 0x552   :  { %1703 = vmatprep.subr.bf16.mxu1 %v1882_v25 }
 0x554   :  { %1686 = vmatpush3.bf16.xpose.msra.mxu0 %v1883_v26 }
 0x555   :  { %1376 = vmatprep.subr.bf16.mxu0 %v1887_v28 }
 0x559   :  { %1704 = vmatpush3.bf16.xpose.msra.mxu1 %v1884_v27 }
 0x55a   :  { %1417 = vmatprep.subr.bf16.mxu1 %v1890_v29 }
 0x5af   :  { %v762_v6 = vpop.xlane.xlu0 %761 }
 0x5b0   :  { %v766_v7 = vmul.f32 0.0078125, %v762_v6  ;;  %v1924_v6 = vld [vmem:[%s2546_s13 + $0xc8] ss:$16 sps:$4 sm:$0xff]  }
 0x5b1   :  { %v764_v8 = vpop.xlane.xlu1 %763 }
 0x5b2   :  { %v768_v9 = vsub.f32 %v757_v49, %v766_v7  ;;  %v767_v10 = vmul.f32 0.0078125, %v764_v8  ;;  %v1896_v49 = vld [vmem:[%s2546_s13 + $0x2c] ss:$16 sps:$4 sm:$0xff]   ;;  %v1929_v7 = vld [vmem:[%s2546_s13 + $0xe4] ss:$16 sps:$4 sm:$0xff]  }
 0x5b3   :  { %v1932_v8 = vld [vmem:[%s2546_s13 + $0xec] ss:$16 sps:$4 sm:$0xff]  }
 0x5b4   :  { %v769_v11 = vsub.f32 %v758_v50, %v767_v10  ;;  %v770_v12 = vmul.f32 %v768_v9, %v768_v9  ;;  %v1891_v50 = vld [vmem:[%s2546_s13 + $0x20] ss:$16 sps:$4 sm:$0xff]   ;;  %v1930_v10 = vld [vmem:[%s2546_s13 + $0xe8] ss:$16 sps:$4 sm:$0xff]  }
 0x5b6   :  { %772 = vadd.xlane.f32.xlu0 %v770_v12  ;;  %v771_v13 = vmul.f32 %v769_v11, %v769_v11 }
 0x5b8   :  { %774 = vadd.xlane.f32.xlu1 %v771_v13 }
 0x643   :  { %v773_v30 = vpop.xlane.xlu0 %772 }
 0x644   :  { %v776_v31 = vmul.f32 0.0078125, %v773_v30 }
 0x645   :  { %v775_v32 = vpop.xlane.xlu1 %774 }
 0x646   :  { %v778_v33 = vadd.f32 1e-05, %v776_v31  ;;  %v777_v34 = vmul.f32 0.0078125, %v775_v32 }
 0x648   :  { %1941 = vrsqrt.f32 %v778_v33  ;;  %v779_v35 = vadd.f32 1e-05, %v777_v34 }
 0x64a   :  { %1943 = vrsqrt.f32 %v779_v35 }
 0x652   :  { %v1942_v36 = vpop.eup %1941 }
 0x653   :  { %v782_v38 = vmul.f32 %v1942_v36, %v768_v9  ;;  %v1927_v9 = vld [vmem:[%s2546_s13 + $0xe0] ss:$16 sps:$4 sm:$0xff]  }
 0x654   :  { %v1944_v39 = vpop.eup %1943 }
 0x655   :  { %v783_v40 = vmul.f32 %v1944_v39, %v769_v11  ;;  %v790_v41 = vmul.f32 %v1558_v37, %v782_v38  ;;  %v867_v11 = vlaneseq }
 0x657   :  { %v791_v43 = vmul.f32 %v1558_v37, %v783_v40  ;;  %v2411_v44 = vadd.f32 %v1559_v42, %v790_v41  ;;  %v868_v12 = vshrl.u32 %v867_v11, 7 }
 0x659   :  { %v2413_v45 = vadd.f32 %v1559_v42, %v791_v43  ;;  %v869_v13 = vsub.s32 0, %v868_v12  ;;  %v877_v14 = vsub.s32 2, %v868_v12  ;;  %v873_v16 = vsub.s32 1, %v868_v12 }
 0x65a   :  { %v881_v19 = vsub.s32 3, %v868_v12 }
 0x65b   :  { %v800_v46 = vpack.c.bf16 %v2413_v45, %v2411_v44  ;;  %v870_v20 = vrot.slane %v865_v15, %v869_v13  ;;  %v878_v21 = vrot.slane %v865_v15, %v877_v14  ;;  %v874_v22 = vrot.slane %v865_v15, %v873_v16  ;;  %v1625_v16 = vld [vmem:[%s2548_s15] ss:$0 sm:$0xff] }
 0x65c   :  { %v882_v23 = vrot.slane %v865_v15, %v881_v19 }
 0x65d   :  { %1687 = vmatprep.mubr.bf16.mxu0 %v800_v46  ;;  %1705 = vmatprep.mubr.bf16.mxu1 %v800_v46 }
 0x65e   :  { %1688 = vmatmul.mubr.bf16.vlgmr.msra.gmra.mrb[16].mxu0 %v800_v46  ;;  %1706 = vmatmul.mubr.bf16.vlgmr.msra.gmra.mrb[16].mxu1 %v800_v46 }
 0x65f   :  { %1377 = vmatpush1.bf16.xpose.msra.mxu0 %v1885_v0  ;;  %1418 = vmatpush1.bf16.xpose.msra.mxu1 %v1888_v47 }
 0x660   :  { %1378 = vmatprep.subr.bf16.mxu0 %v1893_v48  ;;  %1419 = vmatprep.subr.bf16.mxu1 %v1896_v49 }
 0x667   :  { %1379 = vmatpush1.bf16.xpose.msra.mxu0 %v1891_v50  ;;  %1420 = vmatpush1.bf16.xpose.msra.mxu1 %v1894_v51 }
 0x668   :  { %1380 = vmatprep.subr.bf16.mxu0 %v1899_v52  ;;  %1421 = vmatprep.subr.bf16.mxu1 %v1902_v53  ;;  %v1592_v53 = vld [vmem:[%s2547_s14] ss:$0 sm:$0xff] }
 0x66f   :  { %1381 = vmatpush1.bf16.xpose.msra.mxu0 %v1897_v17  ;;  %1422 = vmatpush1.bf16.xpose.msra.mxu1 %v1900_v18 }
 0x670   :  { %1382 = vmatprep.subr.bf16.mxu0 %v1905_v54  ;;  %1423 = vmatprep.subr.bf16.mxu1 %v1908_v55 }
 0x677   :  { %1383 = vmatpush1.bf16.xpose.msra.mxu0 %v1903_v56  ;;  %1424 = vmatpush1.bf16.xpose.msra.mxu1 %v1906_v57 }
 0x678   :  { %1384 = vmatprep.subr.bf16.mxu0 %v1911_v58  ;;  %1425 = vmatprep.subr.bf16.mxu1 %v1914_v59 }
 0x67f   :  { %1385 = vmatpush1.bf16.xpose.msra.mxu0 %v1909_v60  ;;  %1426 = vmatpush1.bf16.xpose.msra.mxu1 %v1912_v61 }
 0x680   :  { %1386 = vmatprep.subr.bf16.mxu0 %v1917_v62  ;;  %1427 = vmatprep.subr.bf16.mxu1 %v1920_v63 }
 0x687   :  { %1387 = vmatpush1.bf16.xpose.msra.mxu0 %v1915_v1  ;;  %1428 = vmatpush1.bf16.xpose.msra.mxu1 %v1918_v2 }
 0x688   :  { %1388 = vmatprep.subr.bf16.mxu0 %v1923_v3  ;;  %1429 = vmatprep.subr.bf16.mxu1 %v1926_v4 }
 0x68f   :  { %1389 = vmatpush1.bf16.xpose.msra.mxu0 %v1921_v5  ;;  %1430 = vmatpush1.bf16.xpose.msra.mxu1 %v1924_v6 }
 0x690   :  { %1390 = vmatprep.subr.bf16.mxu0 %v1929_v7  ;;  %1431 = vmatprep.subr.bf16.mxu1 %v1932_v8 }
 0x697   :  { %1391 = vmatpush1.bf16.xpose.msra.mxu0 %v1927_v9  ;;  %1432 = vmatpush1.bf16.xpose.msra.mxu1 %v1930_v10 }
 0x731   :  { %v1113_v24 = vpop.f32.mrb[16].mxu0  ;;  %v1156_v25 = vpop.f32.mrb[16].mxu1 }
 0x732   :  { %v1114_v26 = vadd.f32 %v1113_v24, %v870_v20  ;;  %v1157_v27 = vadd.f32 %v1156_v25, %v878_v21  ;;  %v1115_v28 = vpop.f32.mrb[17].mxu0  ;;  %v1158_v29 = vpop.f32.mrb[17].mxu1 }
 0x733   :  { %v1116_v30 = vadd.f32 %v1115_v28, %v874_v22  ;;  %v1159_v31 = vadd.f32 %v1158_v29, %v882_v23  ;;  %v1117_v32 = vpop.f32.mrb[18].mxu0  ;;  %v1160_v33 = vpop.f32.mrb[18].mxu1 }
 0x734   :  { %v1118_v34 = vadd.f32 %v1117_v32, %v870_v20  ;;  %v1161_v35 = vadd.f32 %v1160_v33, %v878_v21  ;;  %v1119_v36 = vpop.f32.mrb[19].mxu0  ;;  %v1162_v37 = vpop.f32.mrb[19].mxu1  ;;  %v1165_v40 = vmax.f32 %v1114_v26, 0.0  ;;  %v1167_v41 = vmax.f32 %v1157_v27, 0.0  ;;  %v1626_v21 = vld [vmem:[%s2549_s16] ss:$0 sm:$0xff] }
 0x735   :  { %v1120_v38 = vadd.f32 %v1119_v36, %v874_v22  ;;  %v1163_v39 = vadd.f32 %v1162_v37, %v882_v23  ;;  %v1166_v46 = vmax.f32 %v1116_v30, 0.0  ;;  %v1168_v0 = vmax.f32 %v1159_v31, 0.0 }
 0x736   :  { %v1169_v42 = vmax.f32 %v1118_v34, 0.0  ;;  %v1171_v43 = vmax.f32 %v1161_v35, 0.0 }
 0x737   :  { %v1170_v47 = vmax.f32 %v1120_v38, 0.0  ;;  %v1172_v48 = vmax.f32 %v1163_v39, 0.0 }
 0x738   :  { %v1173_v49 = vpack.c.bf16 %v1169_v42, %v1165_v40  ;;  %v1175_v50 = vpack.c.bf16 %v1171_v43, %v1167_v41 }
 0x739   :  { %v1174_v51 = vpack.c.bf16 %v1170_v47, %v1166_v46  ;;  %v1176_v52 = vpack.c.bf16 %v1172_v48, %v1168_v0 }
 0x73b   :  { %1408 = vmatprep.mubr.bf16.mxu0 %v1174_v51  ;;  %1449 = vmatprep.mubr.bf16.mxu1 %v1176_v52 }
 0x73c   :  { %1409 = vmatmul.mubr.bf16.vlgmr.msra.gmra.mrb[20].mxu0 %v1173_v49  ;;  %1450 = vmatmul.mubr.bf16.vlgmr.msra.gmra.mrb[20].mxu1 %v1175_v50 }
 0x80f   :  { %v1410_v17 = vpop.f32.mrb[20].mxu0  ;;  %v1451_v18 = vpop.f32.mrb[20].mxu1 }
 0x810   :  { %v1411_v54 = vadd.f32 %v1592_v53, %v1410_v17  ;;  %v1412_v55 = vpop.f32.mrb[21].mxu0  ;;  %v1453_v56 = vpop.f32.mrb[21].mxu1 }
 0x811   :  { %v1413_v57 = vpop.f32.mrb[22].mxu0  ;;  %v1454_v58 = vpop.f32.mrb[22].mxu1 }
 0x812   :  { %v1452_v59 = vadd.f32 %v1451_v18, %v1411_v54  ;;  %v1414_v60 = vadd.f32 %v1592_v53, %v1413_v57  ;;  %v1415_v61 = vpop.f32.mrb[23].mxu0  ;;  %v1456_v62 = vpop.f32.mrb[23].mxu1 }
 0x814   :  { %v1455_v63 = vadd.f32 %v1454_v58, %v1414_v60  ;;  %v1458_v1 = vadd.f32 %v1452_v59, %v2411_v44 }
 0x816   :  { %1462 = vadd.xlane.f32.xlu0 %v1458_v1  ;;  %v1459_v2 = vadd.f32 %v1455_v63, %v2413_v45 }
 0x818   :  { %1464 = vadd.xlane.f32.xlu1 %v1459_v2 }
 0x8a3   :  { %v1463_v3 = vpop.xlane.xlu0 %1462 }
 0x8a4   :  { %v1466_v4 = vmul.f32 0.0078125, %v1463_v3 }
 0x8a5   :  { %v1465_v5 = vpop.xlane.xlu1 %1464 }
 0x8a6   :  { %v1468_v6 = vsub.f32 %v1458_v1, %v1466_v4  ;;  %v1467_v7 = vmul.f32 0.0078125, %v1465_v5 }
 0x8a8   :  { %v1469_v8 = vsub.f32 %v1459_v2, %v1467_v7  ;;  %v1470_v9 = vmul.f32 %v1468_v6, %v1468_v6 }
 0x8aa   :  { %1472 = vadd.xlane.f32.xlu0 %v1470_v9  ;;  %v1471_v10 = vmul.f32 %v1469_v8, %v1469_v8 }
 0x8ac   :  { %1474 = vadd.xlane.f32.xlu1 %v1471_v10 }
 0x937   :  { %v1473_v11 = vpop.xlane.xlu0 %1472 }
 0x938   :  { %v1476_v12 = vmul.f32 0.0078125, %v1473_v11 }
 0x939   :  { %v1475_v13 = vpop.xlane.xlu1 %1474 }
 0x93a   :  { %v1478_v14 = vadd.f32 1e-05, %v1476_v12  ;;  %v1477_v15 = vmul.f32 0.0078125, %v1475_v13 }
 0x93c   :  { %1945 = vrsqrt.f32 %v1478_v14  ;;  %v1479_v44 = vadd.f32 1e-05, %v1477_v15 }
 0x93e   :  { %1947 = vrsqrt.f32 %v1479_v44 }
 0x946   :  { %v1946_v45 = vpop.eup %1945 }
 0x947   :  { %v1482_v19 = vmul.f32 %v1946_v45, %v1468_v6 }
 0x948   :  { %v1948_v20 = vpop.eup %1947 }
 0x949   :  { %v1483_v22 = vmul.f32 %v1948_v20, %v1469_v8  ;;  %v1490_v23 = vmul.f32 %v1625_v16, %v1482_v19 }
 0x94b   :  { %v1491_v24 = vmul.f32 %v1625_v16, %v1483_v22  ;;  %v1498_v25 = vadd.f32 %v1626_v21, %v1490_v23 }
 0x94d   :  { %v1499_v26 = vadd.f32 %v1626_v21, %v1491_v24  ;;  %1500 = vst [vmem:[#allocation8] sm:$0xff] %v1498_v25 }
 0x94f   :  { %1501 = vst [vmem:[#allocation8 + $0x8] sm:$0xff] %v1499_v26 }
 0x950   :  { %2026 = shalt.err (!%p2023_p0)
}
 0x951   :  { %s2027_s16 = scalar_lea.hbm %s2550_s17, 256 }
 0x952   :  { %p2028_p1 = scmp.ne.s32.totalorder %s2550_s17, %s2027_s16  ;;  %p2031_p2 = scmp.lt.u32.totalorder %s2027_s16, %s2550_s17 }
 0x954   :  { %p2033_p3 = pnand %p2031_p2, %p2028_p1 }
 0x956   :  { %2036 = shalt.err (!%p2033_p3)
}
 0x957   :  { %s2051_s0 = smov 128   ;;  %s2052_s8 = smov 8  }
 0x958   :  { %1513 = dma.vmem_to_hbm [thread:$0]  %s1508_s5, 256, %s2550_s17, [#allocation4], %s2051_s0, %s2051_s0, %s2052_s8  }
 0x959   :  { %2041 = dma.done.wait [#allocation4], 256  }
 0x95a   :  { %2042 = vsyncadd [#allocation4], 4294967040 }
 0x95b   :  { %1517 = vsyncpa [#allocation3], 1 }
 0x95c   :  { %1518 = vsyncpa [#allocation6], 1 }
 0x95d   :  { %1519 = vsyncpa [#allocation4], 1 }

</bundles_post_ra>
